<compile_context>
chip_gen: v7x
topology: tpu7x:2x2x1
jax: 0.10.0
libtpu: 0.0.40
codegen_flags: <defaults>
</compile_context>

<pallas_src>
import functools

import jax
import jax.numpy as jnp
from jax.experimental import pallas as pl
from jax.experimental.pallas import tpu as pltpu


def _group_norm_kernel(x_ref, w_ref, b_ref, o_ref, *, eps, n_elem):
    # x_ref/o_ref: (1, Gc, S, L)  group-chunk tile, lane-dense last axis
    # w_ref/b_ref: (1, Gc, S, 1)  per-(packed)channel affine, pre-shaped in wrapper
    x = x_ref[...].astype(jnp.float32)

    # One-pass per-group statistics in f32 over the (S, L) tile.
    s1 = jnp.sum(x, axis=(2, 3), keepdims=True)          # (1, Gc, 1, 1)
    s2 = jnp.sum(x * x, axis=(2, 3), keepdims=True)      # (1, Gc, 1, 1)
    mean = s1 * jnp.float32(1.0 / n_elem)
    # Unbiased variance (divide by n-1), matching torch.Tensor.var() default.
    var = (s2 - mean * s1) * jnp.float32(1.0 / (n_elem - 1))
    var = jnp.maximum(var, jnp.float32(0.0))              # guard cancellation
    inv_std = jax.lax.rsqrt(var + jnp.float32(eps))

    # Fold inv_std into the affine -> single FMA on the full block.
    scale = w_ref[...].astype(jnp.float32) * inv_std       # (1, Gc, S, 1)
    shift = b_ref[...].astype(jnp.float32) - mean * scale  # (1, Gc, S, 1)
    o_ref[...] = (x * scale + shift).astype(o_ref.dtype)


def group_norm(x, weight, bias, num_groups, eps=1e-5):
    """x: (N, C, H, W) NCHW; weight/bias: size-C arrays (e.g. (1, C, 1, 1))."""
    N, C, H, W = x.shape
    G = num_groups
    assert C % G == 0
    Cg = C // G
    HW = H * W
    n_elem = Cg * HW
    assert n_elem > 1, "group size must be > 1 for unbiased variance (n-1 divisor)"
    assert weight.size == C and bias.size == C, "affine params must have C elements"

    # ---- sublane packing: (Cg, HW) -> (S, L) = (Cg*k, HW/k) --------------------
    if HW % 128 == 0:
        max_k = HW // 128
        k = max_k  # default: pack as much as the lane constraint allows
        for cand in range(1, max_k + 1):
            if max_k % cand == 0 and Cg * cand >= 8:
                k = cand  # smallest k restoring full f32 sublane occupancy
                break
    else:
        # TODO(synk): pad HW to a multiple of 128 for lane-dense (unmasked) stores.
        k = 1
    S = Cg * k
    L = HW // k

    # ---- group chunking: keep per-step blocks ~<=1 MiB f32 and >= ~8 grid steps -
    bytes_per_group_f32 = S * L * 4
    target = 1 << 20
    Gc = 1
    for d in range(1, G + 1):
        if G % d != 0:
            continue
        steps = N * (G // d)
        if d * bytes_per_group_f32 <= target and steps >= min(8, N * G):
            Gc = d
    n_gchunks = G // Gc

    # ---- explicit scoped-VMEM budget (double-buffered in/out + f32 temporaries) -
    blk_elems = Gc * S * L
    blk_in = blk_elems * x.dtype.itemsize
    blk_f32 = blk_elems * 4
    needed = 4 * blk_in + 6 * blk_f32 + (4 << 20)
    vmem_limit = int(min(max(needed, 32 << 20), 64 << 20))

    # ---- layout prep (all free contiguous reshapes) -----------------------------
    x4 = x.reshape(N, G, S, L)
    w4 = jnp.repeat(weight.reshape(G, Cg), k, axis=1).reshape(1, G, S, 1)
    b4 = jnp.repeat(bias.reshape(G, Cg), k, axis=1).reshape(1, G, S, 1)

    kernel = functools.partial(_group_norm_kernel, eps=eps, n_elem=n_elem)

    out4 = pl.pallas_call(
        kernel,
        out_shape=jax.ShapeDtypeStruct((N, G, S, L), x.dtype),
        grid_spec=pltpu.PrefetchScalarGridSpec(
            num_scalar_prefetch=0,
            grid=(N, n_gchunks),
            in_specs=[
                pl.BlockSpec((1, Gc, S, L), lambda n, g: (n, g, 0, 0)),
                pl.BlockSpec((1, Gc, S, 1), lambda n, g: (0, g, 0, 0)),
                pl.BlockSpec((1, Gc, S, 1), lambda n, g: (0, g, 0, 0)),
            ],
            out_specs=pl.BlockSpec((1, Gc, S, L), lambda n, g: (n, g, 0, 0)),
        ),
        compiler_params=pltpu.CompilerParams(
            dimension_semantics=("parallel", "parallel"),
            vmem_limit_bytes=vmem_limit,
        ),
    )(x4, w4, b4)

    return out4.reshape(N, C, H, W)


def group_norm_reference(x, weight, bias, num_groups, eps=1e-5):
    N, C, H, W = x.shape
    G = num_groups
    xr = x.reshape(N, G, -1).astype(jnp.float32)
    mean = xr.mean(-1, keepdims=True)
    var = xr.var(-1, keepdims=True, ddof=1)  # unbiased, matching torch default
    xn = (xr - mean) / jnp.sqrt(var + eps)
    xn = xn.reshape(N, C, H, W)
    return xn * weight + bias


if __name__ == "__main__":
    key = jax.random.PRNGKey(0)
    k_x, k_w, k_b = jax.random.split(key, 3)

    N, C, H, W = 2, 8, 16, 16
    num_groups = 4
    eps = 1e-5

    x = jax.random.normal(k_x, (N, C, H, W), dtype=jnp.float32)
    # Module __init__ uses ones/zeros; perturb deterministically so the affine
    # path is exercised non-trivially.
    weight = jnp.ones((1, C, 1, 1), jnp.float32) + 0.1 * jax.random.normal(
        k_w, (1, C, 1, 1), dtype=jnp.float32
    )
    bias = jnp.zeros((1, C, 1, 1), jnp.float32) + 0.1 * jax.random.normal(
        k_b, (1, C, 1, 1), dtype=jnp.float32
    )

    out = group_norm(x, weight, bias, num_groups, eps)
    out = jax.block_until_ready(out)

    ref = group_norm_reference(x, weight, bias, num_groups, eps)
    assert out.shape == (N, C, H, W)
    assert jnp.allclose(out, ref, atol=1e-5, rtol=1e-5), "mismatch vs reference"

    print("KERNEL_OK")
</pallas_src>

<mosaic_0001>
module attributes {stable_mosaic.version = 11 : i64} {
  func.func @_group_norm_kernel(%arg0: i32, %arg1: i32, %arg2: memref<1x1x4x128xf32, #tpu.memory_space<vmem>>, %arg3: memref<1x1x4x1xf32, #tpu.memory_space<vmem>>, %arg4: memref<1x1x4x1xf32, #tpu.memory_space<vmem>>, %arg5: memref<1x1x4x128xf32, #tpu.memory_space<vmem>>) attributes {dimension_semantics = [#tpu.dimension_semantics<parallel>, #tpu.dimension_semantics<parallel>], iteration_bounds = array<i64: 2, 4>, scalar_prefetch = 0 : i64, scratch_operands = 0 : i64, tpu.core_type = #tpu.core_type<tc>, window_params = [{transform_indices = @transform_0, window_bounds = array<i64: 1, 1, 4, 128>}, {transform_indices = @transform_1, window_bounds = array<i64: 1, 1, 4, 1>}, {transform_indices = @transform_2, window_bounds = array<i64: 1, 1, 4, 1>}, {transform_indices = @transform_3, window_bounds = array<i64: 1, 1, 4, 128>}]} {
    %c0 = arith.constant 0 : index
    %c0_0 = arith.constant 0 : index
    %c0_1 = arith.constant 0 : index
    %c0_2 = arith.constant 0 : index
    %0 = vector.load %arg2[%c0, %c0_0, %c0_1, %c0_2] : memref<1x1x4x128xf32, #tpu.memory_space<vmem>>, vector<1x1x4x128xf32>
    %cst = arith.constant dense<0.000000e+00> : vector<1x1xf32>
    %1 = vector.multi_reduction <add>, %0, %cst [2, 3] : vector<1x1x4x128xf32> to vector<1x1xf32>
    %2 = vector.shape_cast %1 : vector<1x1xf32> to vector<1x1x1x1xf32>
    %3 = arith.mulf %0, %0 : vector<1x1x4x128xf32>
    %cst_3 = arith.constant dense<0.000000e+00> : vector<1x1xf32>
    %4 = vector.multi_reduction <add>, %3, %cst_3 [2, 3] : vector<1x1x4x128xf32> to vector<1x1xf32>
    %5 = vector.shape_cast %4 : vector<1x1xf32> to vector<1x1x1x1xf32>
    %cst_4 = arith.constant 0.001953125 : f32
    %6 = vector.broadcast %cst_4 : f32 to vector<1x1x1x1xf32>
    %7 = arith.mulf %2, %6 : vector<1x1x1x1xf32>
    %8 = arith.mulf %7, %2 : vector<1x1x1x1xf32>
    %9 = arith.subf %5, %8 : vector<1x1x1x1xf32>
    %cst_5 = arith.constant 0.00195694715 : f32
    %10 = vector.broadcast %cst_5 : f32 to vector<1x1x1x1xf32>
    %11 = arith.mulf %9, %10 : vector<1x1x1x1xf32>
    %cst_6 = arith.constant 0.000000e+00 : f32
    %12 = vector.broadcast %cst_6 : f32 to vector<1x1x1x1xf32>
    %13 = arith.maximumf %11, %12 : vector<1x1x1x1xf32>
    %cst_7 = arith.constant 9.99999974E-6 : f32
    %14 = vector.broadcast %cst_7 : f32 to vector<1x1x1x1xf32>
    %15 = arith.addf %13, %14 : vector<1x1x1x1xf32>
    %16 = math.rsqrt %15 : vector<1x1x1x1xf32>
    %c0_8 = arith.constant 0 : index
    %c0_9 = arith.constant 0 : index
    %c0_10 = arith.constant 0 : index
    %c0_11 = arith.constant 0 : index
    %17 = vector.load %arg3[%c0_8, %c0_9, %c0_10, %c0_11] : memref<1x1x4x1xf32, #tpu.memory_space<vmem>>, vector<1x1x4x1xf32>
    %18 = vector.broadcast %16 : vector<1x1x1x1xf32> to vector<1x1x4x1xf32>
    %19 = arith.mulf %17, %18 : vector<1x1x4x1xf32>
    %c0_12 = arith.constant 0 : index
    %c0_13 = arith.constant 0 : index
    %c0_14 = arith.constant 0 : index
    %c0_15 = arith.constant 0 : index
    %20 = vector.load %arg4[%c0_12, %c0_13, %c0_14, %c0_15] : memref<1x1x4x1xf32, #tpu.memory_space<vmem>>, vector<1x1x4x1xf32>
    %21 = vector.broadcast %7 : vector<1x1x1x1xf32> to vector<1x1x4x1xf32>
    %22 = arith.mulf %21, %19 : vector<1x1x4x1xf32>
    %23 = arith.subf %20, %22 : vector<1x1x4x1xf32>
    %24 = vector.broadcast %19 : vector<1x1x4x1xf32> to vector<1x1x4x128xf32>
    %25 = arith.mulf %0, %24 : vector<1x1x4x128xf32>
    %26 = vector.broadcast %23 : vector<1x1x4x1xf32> to vector<1x1x4x128xf32>
    %27 = arith.addf %25, %26 : vector<1x1x4x128xf32>
    %c0_16 = arith.constant 0 : index
    %c0_17 = arith.constant 0 : index
    %c0_18 = arith.constant 0 : index
    %c0_19 = arith.constant 0 : index
    %28 = vector.load %arg5[%c0_16, %c0_17, %c0_18, %c0_19] : memref<1x1x4x128xf32, #tpu.memory_space<vmem>>, vector<1x1x4x128xf32>
    tpu.vector_store %arg5[%c0_16, %c0_17, %c0_18, %c0_19], %27 {strides = array<i32>} : memref<1x1x4x128xf32, #tpu.memory_space<vmem>>, vector<1x1x4x128xf32>,
    return
  }
  func.func @transform_0(%arg0: i32, %arg1: i32) -> (i32, i32, i32, i32) {
    %c0_i32 = arith.constant 0 : i32
    %c0_i32_0 = arith.constant 0 : i32
    %c0_i32_1 = arith.constant 0 : i32
    return %arg0, %arg1, %c0_i32, %c0_i32_0 : i32, i32, i32, i32
  }
  func.func @transform_1(%arg0: i32, %arg1: i32) -> (i32, i32, i32, i32) {
    %c0_i32 = arith.constant 0 : i32
    %c0_i32_0 = arith.constant 0 : i32
    %c0_i32_1 = arith.constant 0 : i32
    %c0_i32_2 = arith.constant 0 : i32
    return %c0_i32, %arg1, %c0_i32_0, %c0_i32_1 : i32, i32, i32, i32
  }
  func.func @transform_2(%arg0: i32, %arg1: i32) -> (i32, i32, i32, i32) {
    %c0_i32 = arith.constant 0 : i32
    %c0_i32_0 = arith.constant 0 : i32
    %c0_i32_1 = arith.constant 0 : i32
    %c0_i32_2 = arith.constant 0 : i32
    return %c0_i32, %arg1, %c0_i32_0, %c0_i32_1 : i32, i32, i32, i32
  }
  func.func @transform_3(%arg0: i32, %arg1: i32) -> (i32, i32, i32, i32) {
    %c0_i32 = arith.constant 0 : i32
    %c0_i32_0 = arith.constant 0 : i32
    %c0_i32_1 = arith.constant 0 : i32
    return %arg0, %arg1, %c0_i32, %c0_i32_0 : i32, i32, i32, i32
  }
}

</mosaic_0001>

<bundles_post_ra>
// kernel: tpu_custom_call.1
= control target key start
LH: loop header
LB: loop body
LE: loop exit
PB: predicated region body
PF: predicated region fallthrough
CT: control target
= control target key end

     0   :  { %8 = vsyncpa [#allocation3], 0  ;;  %s748_s0 = inlined_call_operand.vmem [shape: f32[2,4,4,128], index: 0, kind: input, shape index: {}]   ;;  %s749_s1 = inlined_call_operand.vmem [shape: f32[1,4,4,1], index: 1, kind: input, shape index: {}]   ;;  %s750_s2 = inlined_call_operand.vmem [shape: f32[1,4,4,1], index: 2, kind: input, shape index: {}]   ;;  %s751_s3 = inlined_call_operand.hbm [shape: f32[2,4,4,128], index: 3, kind: output, shape index: {}]  }
   0x1   :  { %10 = vsyncpa [#allocation3 + $0x1], 0  ;;  %s601_s12 = smov 0   ;;  %s603_s13 = smov 0  }
   0x2   :  { %s605_s14 = smov 0   ;;  %s607_s15 = smov 0  }
   0x3   :  { %s609_s16 = smov 0   ;;  %s611_s17 = smov 0  }
   0x4   :  { %s613_s18 = smov 0   ;;  %s615_s19 = smov 0  }
   0x5 LB: > { %s392_s20 = sadd.s32 4294967295, %s577_s19   ;;  %s393_s21 = sadd.s32 4294967294, %s577_s19   ;;  %s577_s19 = sphi %s615_s19, %s16_s19   ;;  %s573_s18 = sphi %s613_s18, %s760_s18   ;;  %s569_s17 = sphi %s611_s17, %s759_s17   ;;  %s565_s16 = sphi %s609_s16, %s758_s16   ;;  %s561_s15 = sphi %s607_s15, %s757_s15   ;;  %s557_s14 = sphi %s605_s14, %s756_s14   ;;  %s553_s13 = sphi %s603_s13, %s755_s13   ;;  %s549_s12 = sphi %s601_s12, %s754_s12  }
   0x6   : > { %s25_s22 = sadd.s32 1, %s569_s17  ;;  %s28_s23 = sadd.s32 1, %s573_s18 }
   0x7   : > { %p26_p0 = scmp.ge.s32.totalorder %s25_s22, 4  ;;  %p127_p1 = scmp.ne.s32.totalorder %s557_s14, %s553_s13 }
   0x8   : > { %p128_p2 = scmp.eq.s32.totalorder %s392_s20, 7  ;;  %p133_p5 = scmp.ne.s32.totalorder %s553_s13, %s549_s12 }
   0x9   : > { %s762_s22 = smov (%p26_p0, %s25_s22), 0  ;;  %s764_s23 = smov (!%p26_p0, %s28_s23), %s573_s18 }
   0xa   : > { %s113_s24 = ssub.s32 %s569_s17, %s762_s22  ;;  %p652_p3 = por %p128_p2, %p127_p1 }
   0xb   : > { %p30_p4 = scmp.ge.s32.totalorder %s764_s23, 2  ;;  %p134_p6 = scmp.eq.s32.totalorder %s393_s21, 7 }
   0xc   : > { %p396_p7 = scmp.ge.s32.totalorder %s577_s19, 1  ;;  %p177_p9 = scmp.lt.s32.totalorder %s577_s19, 9 }
   0xd   : > { %s766_s23 = smov (%p30_p4, %s764_s23), 0  ;;  %p661_p8 = por %p134_p6, %p133_p5 }
   0xe   : > { %s112_s27 = ssub.s32 %s573_s18, %s766_s23  ;;  %s117_s28 = sadd.s32 1, %s557_s14 }
   0xf   : > { %s114_s29 = sor.u32 %s113_s24, %s112_s27  ;;  %p178_p10 = pnand %p396_p7, %p177_p9 }
  0x10   : > { %p115_p11 = scmp.eq.s32.totalorder %s114_s29, 0  ;;  %p212_p12 = scmp.lt.s32.totalorder (!%p178_p10), %s565_s16, 1  ;;  %vm229_vm0 = vcmask (!%p178_p10), 1043456   ;;  %v579_v4 = vmov (!%p178_p10), 0  }
  0x11   : > { %181 = sbr.rel (%p178_p10) target bundleno = 359 (0x167), region = 32  ;;  %p214_p13 = scmp.lt.s32.totalorder (!%p178_p10), %s561_s15, 3  ;;  %479 = vset.pattern.permute.xlu1 (!%p178_p10), %v579_v4  ;;  %480 = vset.pattern.permute.xlu0 (!%p178_p10), %v579_v4 }
  0x12   : > { %s670_s30 = scalar_select %p115_p11, %s557_s14, %s117_s28  }
  0x18   : > { %s213_s4 = scalar_select %p212_p12, %s565_s16, 1 }
  0x19   : > { %s676_s5 = scalar_select %p214_p13, %s561_s15, 3 }
  0x1a   : > { %s398_s6 = sshll.u32 %s213_s4, 2 }
  0x1b   : > { %s217_s7 = sadd.s32 %s398_s6, %s676_s5  ;;  %s400_s20 = sshll.u32 %s676_s5, 2 }
  0x1c   : > { %s399_s8 = sshll.u32 %s217_s7, 2  ;;  %s223_s27 = scalar_lea.vmem %s749_s1, %s400_s20 }
  0x1d   : > { %s219_s11 = scalar_lea.vmem %s748_s0, %s399_s8  ;;  %v256_v25 = vld [vmem:[%s223_s27] sm:$0xf]  ;;  %s227_s4 = scalar_lea.vmem %s750_s2, %s400_s20 }
  0x1e   : > { %v228_v0 = vld [vmem:[%s219_s11] sm:$0xf]  ;;  %s209_s6 = sand.u32 1, %s553_s13   ;;  %s403_s5 = sshll.u32 %s565_s16, 2 }
  0x1f   : > { %v230_v1 = vsel %vm229_vm0, %v228_v0, 0.0  ;;  %v239_v2 = vmul.f32 %v228_v0, %v228_v0  ;;  %v258_v28 = vld [vmem:[%s227_s4] sm:$0xf]  ;;  %s397_s7 = sshll.u32 %s209_s6, 2  ;;  %s286_s8 = sadd.s32 %s561_s15, %s403_s5 }
  0x20   : > { %231 = vadd.xlane.f32.xlu0 %v230_v1  ;;  %s404_s9 = sshll.u32 %s286_s8, 6  ;;  %s211_s10 = scalar_lea.vmem [#allocation2], %s397_s7 }
  0x21   : > { %v240_v3 = vsel %vm229_vm0, %v239_v2, 0.0  ;;  %s290_s11 = sshll.u32 %s211_s10, 4  ;;  %s695_s24 = scalar_lea.hbm %s751_s3, %s404_s9  ;;  %s697_s11 = int_to_ptr.vmem [resolvable:$true] %s290_s11 }
  0x22   : > { %s275_s16 = scalar_lea.sflag [#allocation3], %s209_s6  ;;  %s483_s15 = scalar_lea.vmem %s697_s11, 64 }
  0x23   : > { %p484_p0 = scmp.ne.s32.totalorder %s697_s11, %s483_s15  ;;  %s580_s27 = smov [#allocation2]  }
  0x24   : > { %241 = vadd.xlane.f32.xlu0 %v240_v3  ;;  %s487_s28 = sshll.u32 %s580_s27, 4  ;;  %s488_s28 = int_to_ptr.vmem [resolvable:$false] %s487_s28 }
  0x25   : > { %p485_p1 = pnand %p484_p0, %p652_p3  ;;  %s489_s29 = scalar_lea.vmem %s488_s28, 128 }
  0x26   : > { %p490_p4 = scmp.lt.s32.totalorder %s697_s11, %s488_s28  ;;  %p491_p5 = scmp.lt.s32.totalorder %s489_s29, %s483_s15 }
  0x27   : > { %p486_p2 = pneg %p485_p1 }
  0x28   : > { %p492_p6 = por %p491_p5, %p490_p4 }
  0x2a   : > { %p493_p7 = pnand %p492_p6, %p486_p2 }
  0xad   : > { %v232_v5 = vpop.xlane.xlu0 %231 }
  0xae   : > { %v233_v6 = vrot.slane %v232_v5, 4 }
  0xb0   : > { %v234_v7 = vadd.f32 %v233_v6, %v232_v5 }
  0xb1   : > { %v242_v8 = vpop.xlane.xlu0 %241 }
  0xb2   : > { %v235_v9 = vrot.slane %v234_v7, 2  ;;  %v243_v10 = vrot.slane %v242_v8, 4 }
  0xb4   : > { %v236_v11 = vadd.f32 %v235_v9, %v234_v7  ;;  %v244_v12 = vadd.f32 %v243_v10, %v242_v8 }
  0xb6   : > { %v237_v13 = vrot.slane %v236_v11, 1  ;;  %v245_v14 = vrot.slane %v244_v12, 2 }
  0xb8   : > { %v238_v15 = vadd.f32 %v237_v13, %v236_v11  ;;  %v246_v16 = vadd.f32 %v245_v14, %v244_v12 }
  0xba   : > { %v247_v17 = vrot.slane %v246_v16, 1  ;;  %v249_v18 = vmul.f32 0.001953125, %v238_v15 }
  0xbc   : > { %v248_v19 = vadd.f32 %v247_v17, %v246_v16  ;;  %v250_v20 = vmul.f32 %v249_v18, %v238_v15 }
  0xbe   : > { %v251_v21 = vsub.f32 %v248_v19, %v250_v20 }
  0xc0   : > { %v252_v22 = vmul.f32 0.0019569471, %v251_v21 }
  0xc2   : > { %v253_v23 = vmax.f32 %v252_v22, 0.0 }
  0xc4   : > { %v254_v24 = vadd.f32 1e-05, %v253_v23 }
  0xc6   : > { %481 = vrsqrt.f32 %v254_v24 }
  0xd0   : > { %v482_v26 = vpop.eup %481 }
  0xd1   : > { %v257_v27 = vmul.f32 %v482_v26, %v256_v25 }
  0xd3   : > { %263 = vperm.xlu1 %479, %v257_v27   ;;  %v259_v29 = vmul.f32 %v257_v27, %v249_v18 }
  0xd5   : > { %v260_v30 = vsub.f32 %v258_v28, %v259_v29 }
  0xd7   : > { %269 = vperm.xlu1 %479, %v260_v30  }
 0x152   : > { %v264_v31 = vpop.permute.xlu1 %263 }
 0x153   : > { %v266_v32 = vmul.f32 %v264_v31, %v228_v0 }
 0x156   : > { %v270_v33 = vpop.permute.xlu1 %269 }
 0x157   : > { %v272_v34 = vadd.f32 %v270_v33, %v266_v32 }
 0x159   : > { %273 = vst [vmem:[%s211_s10] sm:$0xf] %v272_v34 }
 0x15a   : > { %496 = shalt.err (!%p493_p7)
}
 0x15b   : > { %s497_s4 = scalar_lea.hbm %s695_s24, 64  ;;  %s501_s5 = scalar_lea.hbm %s751_s3, 512 }
 0x15c   : > { %p498_p9 = scmp.ne.s32.totalorder %s695_s24, %s497_s4  ;;  %p502_p12 = scmp.lt.u32.totalorder %s695_s24, %s751_s3 }
 0x15d   : > { %p503_p13 = scmp.lt.u32.totalorder %s501_s5, %s497_s4  ;;  %p505_p1 = scmp.lt.u32.totalorder %s497_s4, %s695_s24 }
 0x15e   : > { %p499_p10 = pnand %p498_p9, %p652_p3 }
 0x15f   : > { %p504_p0 = por %p503_p13, %p502_p12 }
 0x160   : > { %p500_p11 = pneg %p499_p10 }
 0x161   : > { %p506_p2 = por %p505_p1, %p504_p0 }
 0x163   : > { %p507_p4 = pnand %p506_p2, %p500_p11 }
 0x165   : > { %510 = shalt.err (!%p507_p4)
}
 0x166   : > { %407 = dma.vmem_to_hbm [thread:$0]  (%p652_p3), %s697_s11, 64, %s695_s24, %s275_s16  }
 0x167 PF: > { %p413_p5 = scmp.ge.s32.totalorder %s577_s19, 2  ;;  %s302_s10 = sand.u32 1, %s549_s12  }
 0x168   : > { %s303_s20 = scalar_lea.sflag [#allocation3], %s302_s10 }
 0x169   : > { %p410_p6 = pnand %p413_p5, %p661_p8 }
 0x16b   : > { %544 = dma.done.wait (!%p410_p6), %s303_s20, 64  }
 0x16c   : > { %546 = vsyncadd (!%p410_p6), %s303_s20, 4294967232  ;;  %s16_s19 = sadd.s32 1, %s577_s19   ;;  %s754_s12 = smov %s553_s13 }
 0x16d   : > { %p13_p7 = scmp.ge.s32.totalorder %s16_s19, 10   ;;  %s755_s13 = smov %s557_s14 }
 0x16e   : > { %s756_s14 = smov %s670_s30  ;;  %s757_s15 = smov %s569_s17 }
 0x16f   : > { %s758_s16 = smov %s573_s18  ;;  %s759_s17 = smov %s762_s22 }
 0x170   : > { %s760_s18 = smov %s766_s23  ;;  %15 = sbr.rel (!%p13_p7) target bundleno = 5 (0x5), region = 73 }
 0x177   :  { %308 = vsyncpa [#allocation3], 1 }
 0x178   :  { %310 = vsyncpa [#allocation3 + $0x1], 1 }

</bundles_post_ra>
